<compile_context>
chip_gen: v6e
topology: v6e:2x2x1
jax: 0.10.0
libtpu: 0.0.40
codegen_flags: <defaults>
</compile_context>

<pallas_src>
import jax
import jax.numpy as jnp
from jax.experimental import pallas as pl
from jax.experimental.pallas import tpu as pltpu


_F32_BYTES = 4
_TILE_BYTE_BUDGET = 6 * 1024 * 1024   # per activation tile (f32)
_MAX_TILE_R = 2048                    # bounds (tile_r, 11)->(tile_r, 128) slab padding
_VMEM_LIMIT_BYTES = 40 * 1024 * 1024  # fits v7x's 64 MiB/TC with headroom


def _round_up(x, m):
    return ((x + m - 1) // m) * m


def _choose_tiles(R, S):
    """Pick (tile_r, tile_s): lane-dense first, then grow rows to the budget."""
    budget_elems = _TILE_BYTE_BUDGET // _F32_BYTES
    s_full = _round_up(S, 128)
    r_full = _round_up(R, 8)

    # Take as much of the spatial axis as the budget allows with a minimal
    # 8-row strip (tile_s may exceed 2048 when R is small), then grow rows.
    tile_s = min(s_full, max(128, ((budget_elems // 8) // 128) * 128))
    tile_r = min(r_full, _MAX_TILE_R,
                 max(8, ((budget_elems // tile_s) // 8) * 8))

    # v7x megacore: a non-trivial problem should yield >= 2 grid programs
    # along a "parallel" axis so both TensorCores get work.
    if (pl.cdiv(R, tile_r) * pl.cdiv(S, tile_s)) == 1 and R * S * _F32_BYTES > (1 << 20):
        if tile_r >= 16:
            tile_r = _round_up(pl.cdiv(tile_r, 2), 8)
        else:
            tile_s = max(128, _round_up(pl.cdiv(tile_s, 2), 128))
    return tile_r, tile_s


def _rate_est_kernel(x_ref, p_ref, o_ref):
    # x_ref: (TILE_R, TILE_S) activation tile (rows = (b, c), lanes = spatial)
    # p_ref: (TILE_R, 11) precomputed per-row params, column order:
    #        [sp(h1), b1, sp(h2), b2, sp(h3), b3, sp(h4), b4,
    #         tanh(a1), tanh(a2), tanh(a3)]
    # o_ref: (TILE_R, TILE_S)
    x = x_ref[...].astype(jnp.float32)
    p = p_ref[...].astype(jnp.float32)

    # (TILE_R, 1) per-row scalars; broadcasts against (TILE_R, TILE_S) below
    # are tile-loop-invariant so the lane broadcast is hoisted once per tile.
    sh1, b1 = p[:, 0:1], p[:, 1:2]
    sh2, b2 = p[:, 2:3], p[:, 3:4]
    sh3, b3 = p[:, 4:5], p[:, 5:6]
    sh4, b4 = p[:, 6:7], p[:, 7:8]
    ta1, ta2, ta3 = p[:, 8:9], p[:, 9:10], p[:, 10:11]

    # x = softplus(h1)*x + b1 ; x = tanh(a1)*tanh(x) + x ; ... ; sigmoid(x)
    x = sh1 * x + b1
    x = ta1 * jnp.tanh(x) + x
    x = sh2 * x + b2
    x = ta2 * jnp.tanh(x) + x
    x = sh3 * x + b3
    x = ta3 * jnp.tanh(x) + x
    x = sh4 * x + b4
    # sigmoid(x) == 0.5*tanh(0.5*x) + 0.5: single EUP push, no VALU divide.
    x = 0.5 * jnp.tanh(0.5 * x) + 0.5

    o_ref[...] = x.astype(o_ref.dtype)


def rate_est_net(x_nchw, params):
    """Apply RateEstNet forward.

    Args:
      x_nchw: (B, C, H, W) float32 array.
      params: dict with keys h1,b1,h2,b2,h3,b3,h4,b4,a1,a2,a3, each shape (C,).
    Returns:
      (B, C, H, W) float32 array.
    """
    B, C, H, W = x_nchw.shape
    R, S = B * C, H * W
    x_rows = x_nchw.reshape(R, S)  # free view of NCHW, no transpose

    # Precompute loop-invariant transcendentals once (tiny, pure JAX), and
    # expand per-channel params to one row per (b, c) pair (row r -> r % C).
    sp = jax.nn.softplus
    per_c = jnp.stack(
        [
            sp(params["h1"]), params["b1"],
            sp(params["h2"]), params["b2"],
            sp(params["h3"]), params["b3"],
            sp(params["h4"]), params["b4"],
            jnp.tanh(params["a1"]),
            jnp.tanh(params["a2"]),
            jnp.tanh(params["a3"]),
        ],
        axis=-1,
    ).astype(jnp.float32)                    # (C, 11)
    p_rows = jnp.tile(per_c, (B, 1))         # (R, 11)

    tile_r, tile_s = _choose_tiles(R, S)
    # Spatial (j) innermost so the param-slab DMA (index map independent of j)
    # is only re-issued when the row tile changes.
    grid = (pl.cdiv(R, tile_r), pl.cdiv(S, tile_s))

    out_rows = pl.pallas_call(
        _rate_est_kernel,
        out_shape=jax.ShapeDtypeStruct((R, S), x_nchw.dtype),
        grid_spec=pltpu.PrefetchScalarGridSpec(
            num_scalar_prefetch=0,
            grid=grid,
            in_specs=[
                pl.BlockSpec((tile_r, tile_s), lambda i, j: (i, j)),
                pl.BlockSpec((tile_r, 11), lambda i, j: (i, 0)),
            ],
            out_specs=pl.BlockSpec((tile_r, tile_s), lambda i, j: (i, j)),
        ),
        compiler_params=pltpu.CompilerParams(
            dimension_semantics=("parallel", "parallel"),
            vmem_limit_bytes=_VMEM_LIMIT_BYTES,
        ),
    )(x_rows, p_rows)

    return out_rows.reshape(B, C, H, W)


def _reference(x_nchw, params):
    """Pure-JAX reference mirroring the PyTorch forward."""
    def bc(v):  # (C,) -> (1, C, 1, 1)
        return v.reshape(1, -1, 1, 1)

    sp = jax.nn.softplus
    x = x_nchw
    x = sp(bc(params["h1"])) * x + bc(params["b1"])
    x = jnp.tanh(bc(params["a1"])) * jnp.tanh(x) + x
    x = sp(bc(params["h2"])) * x + bc(params["b2"])
    x = jnp.tanh(bc(params["a2"])) * jnp.tanh(x) + x
    x = sp(bc(params["h3"])) * x + bc(params["b3"])
    x = jnp.tanh(bc(params["a3"])) * jnp.tanh(x) + x
    x = sp(bc(params["h4"])) * x + bc(params["b4"])
    return jax.nn.sigmoid(x)


if __name__ == "__main__":
    B, C, H, W = 2, 4, 16, 16

    key = jax.random.PRNGKey(0)
    kx, *kp = jax.random.split(key, 12)
    x = jax.random.normal(kx, (B, C, H, W), dtype=jnp.float32)

    names = ("h1", "b1", "h2", "b2", "h3", "b3", "h4", "b4", "a1", "a2", "a3")
    params = {
        name: jax.random.normal(k, (C,), dtype=jnp.float32)
        for name, k in zip(names, kp)
    }

    out = rate_est_net(x, params)
    out = jax.block_until_ready(out)

    ref = _reference(x, params)
    assert out.shape == (B, C, H, W)
    assert jnp.allclose(out, ref, atol=1e-5, rtol=1e-5), "mismatch vs reference"

    print("KERNEL_OK")
</pallas_src>

<mosaic_0001>
module attributes {stable_mosaic.version = 11 : i64} {
  func.func @_rate_est_kernel(%arg0: i32, %arg1: i32, %arg2: memref<8x256xf32, #tpu.memory_space<vmem>>, %arg3: memref<8x11xf32, #tpu.memory_space<vmem>>, %arg4: memref<8x256xf32, #tpu.memory_space<vmem>>) attributes {dimension_semantics = [#tpu.dimension_semantics<parallel>, #tpu.dimension_semantics<parallel>], iteration_bounds = array<i64: 1, 1>, scalar_prefetch = 0 : i64, scratch_operands = 0 : i64, tpu.core_type = #tpu.core_type<tc>, window_params = [{transform_indices = @transform_0, window_bounds = array<i64: 8, 256>}, {transform_indices = @transform_1, window_bounds = array<i64: 8, 11>}, {transform_indices = @transform_2, window_bounds = array<i64: 8, 256>}]} {
    %c0 = arith.constant 0 : index
    %c0_0 = arith.constant 0 : index
    %0 = vector.load %arg2[%c0, %c0_0] : memref<8x256xf32, #tpu.memory_space<vmem>>, vector<8x256xf32>
    %c0_1 = arith.constant 0 : index
    %c0_2 = arith.constant 0 : index
    %1 = vector.load %arg3[%c0_1, %c0_2] : memref<8x11xf32, #tpu.memory_space<vmem>>, vector<8x11xf32>
    %2 = vector.extract_strided_slice %1 {offsets = [0, 0], sizes = [8, 1], strides = [1, 1]} : vector<8x11xf32> to vector<8x1xf32>
    %3 = vector.extract_strided_slice %1 {offsets = [0, 1], sizes = [8, 1], strides = [1, 1]} : vector<8x11xf32> to vector<8x1xf32>
    %4 = vector.extract_strided_slice %1 {offsets = [0, 2], sizes = [8, 1], strides = [1, 1]} : vector<8x11xf32> to vector<8x1xf32>
    %5 = vector.extract_strided_slice %1 {offsets = [0, 3], sizes = [8, 1], strides = [1, 1]} : vector<8x11xf32> to vector<8x1xf32>
    %6 = vector.extract_strided_slice %1 {offsets = [0, 4], sizes = [8, 1], strides = [1, 1]} : vector<8x11xf32> to vector<8x1xf32>
    %7 = vector.extract_strided_slice %1 {offsets = [0, 5], sizes = [8, 1], strides = [1, 1]} : vector<8x11xf32> to vector<8x1xf32>
    %8 = vector.extract_strided_slice %1 {offsets = [0, 6], sizes = [8, 1], strides = [1, 1]} : vector<8x11xf32> to vector<8x1xf32>
    %9 = vector.extract_strided_slice %1 {offsets = [0, 7], sizes = [8, 1], strides = [1, 1]} : vector<8x11xf32> to vector<8x1xf32>
    %10 = vector.extract_strided_slice %1 {offsets = [0, 8], sizes = [8, 1], strides = [1, 1]} : vector<8x11xf32> to vector<8x1xf32>
    %11 = vector.extract_strided_slice %1 {offsets = [0, 9], sizes = [8, 1], strides = [1, 1]} : vector<8x11xf32> to vector<8x1xf32>
    %12 = vector.extract_strided_slice %1 {offsets = [0, 10], sizes = [8, 1], strides = [1, 1]} : vector<8x11xf32> to vector<8x1xf32>
    %13 = vector.broadcast %2 : vector<8x1xf32> to vector<8x256xf32>
    %14 = arith.mulf %13, %0 : vector<8x256xf32>
    %15 = vector.broadcast %3 : vector<8x1xf32> to vector<8x256xf32>
    %16 = arith.addf %14, %15 : vector<8x256xf32>
    %17 = math.tanh %16 : vector<8x256xf32>
    %18 = vector.broadcast %10 : vector<8x1xf32> to vector<8x256xf32>
    %19 = arith.mulf %18, %17 : vector<8x256xf32>
    %20 = arith.addf %19, %16 : vector<8x256xf32>
    %21 = vector.broadcast %4 : vector<8x1xf32> to vector<8x256xf32>
    %22 = arith.mulf %21, %20 : vector<8x256xf32>
    %23 = vector.broadcast %5 : vector<8x1xf32> to vector<8x256xf32>
    %24 = arith.addf %22, %23 : vector<8x256xf32>
    %25 = math.tanh %24 : vector<8x256xf32>
    %26 = vector.broadcast %11 : vector<8x1xf32> to vector<8x256xf32>
    %27 = arith.mulf %26, %25 : vector<8x256xf32>
    %28 = arith.addf %27, %24 : vector<8x256xf32>
    %29 = vector.broadcast %6 : vector<8x1xf32> to vector<8x256xf32>
    %30 = arith.mulf %29, %28 : vector<8x256xf32>
    %31 = vector.broadcast %7 : vector<8x1xf32> to vector<8x256xf32>
    %32 = arith.addf %30, %31 : vector<8x256xf32>
    %33 = math.tanh %32 : vector<8x256xf32>
    %34 = vector.broadcast %12 : vector<8x1xf32> to vector<8x256xf32>
    %35 = arith.mulf %34, %33 : vector<8x256xf32>
    %36 = arith.addf %35, %32 : vector<8x256xf32>
    %37 = vector.broadcast %8 : vector<8x1xf32> to vector<8x256xf32>
    %38 = arith.mulf %37, %36 : vector<8x256xf32>
    %39 = vector.broadcast %9 : vector<8x1xf32> to vector<8x256xf32>
    %40 = arith.addf %38, %39 : vector<8x256xf32>
    %cst = arith.constant 5.000000e-01 : f32
    %41 = vector.broadcast %cst : f32 to vector<8x256xf32>
    %42 = arith.mulf %41, %40 : vector<8x256xf32>
    %43 = math.tanh %42 : vector<8x256xf32>
    %cst_3 = arith.constant 5.000000e-01 : f32
    %44 = vector.broadcast %cst_3 : f32 to vector<8x256xf32>
    %45 = arith.mulf %44, %43 : vector<8x256xf32>
    %cst_4 = arith.constant 5.000000e-01 : f32
    %46 = vector.broadcast %cst_4 : f32 to vector<8x256xf32>
    %47 = arith.addf %45, %46 : vector<8x256xf32>
    %c0_5 = arith.constant 0 : index
    %c0_6 = arith.constant 0 : index
    %48 = vector.load %arg4[%c0_5, %c0_6] : memref<8x256xf32, #tpu.memory_space<vmem>>, vector<8x256xf32>
    tpu.vector_store %arg4[%c0_5, %c0_6], %47 {strides = array<i32>} : memref<8x256xf32, #tpu.memory_space<vmem>>, vector<8x256xf32>,
    return
  }
  func.func @transform_0(%arg0: i32, %arg1: i32) -> (i32, i32) {
    %c0_i32 = arith.constant 0 : i32
    return %arg0, %arg1 : i32, i32
  }
  func.func @transform_1(%arg0: i32, %arg1: i32) -> (i32, i32) {
    %c0_i32 = arith.constant 0 : i32
    %c0_i32_0 = arith.constant 0 : i32
    return %arg0, %c0_i32 : i32, i32
  }
  func.func @transform_2(%arg0: i32, %arg1: i32) -> (i32, i32) {
    %c0_i32 = arith.constant 0 : i32
    return %arg0, %arg1 : i32, i32
  }
}

</mosaic_0001>

<bundles_post_ra>
// kernel: tpu_custom_call.1
= control target key start
LH: loop header
LB: loop body
LE: loop exit
PB: predicated region body
PF: predicated region fallthrough
CT: control target
= control target key end

     0   :  { %7 = vsyncpa [#allocation3], 0  ;;  %s290_s0 = inlined_call_operand.hbm [shape: f32[8,256], index: 0, kind: input, shape index: {}]   ;;  %s291_s1 = inlined_call_operand.hbm [shape: f32[8,11], index: 1, kind: input, shape index: {}]   ;;  %s292_s2 = inlined_call_operand.hbm [shape: f32[8,256], index: 2, kind: output, shape index: {}]  }
   0x1   :  { %8 = vsyncpa [#allocation6], 0 }
   0x2   :  { %9 = vsyncpa [#allocation4], 0  ;;  %s252_s9 = smov [#allocation2]   ;;  %s253_s11 = smov [#allocation5]  }
   0x3   :  { %s16_s10 = sshll.u32 %s252_s9, 4  ;;  %s26_s12 = sshll.u32 %s253_s11, 4  ;;  %s17_s10 = int_to_ptr.vmem [resolvable:$true] %s16_s10  ;;  %s27_s12 = int_to_ptr.vmem [resolvable:$true] %s26_s12 }
   0x4   :  { %s194_s13 = scalar_lea.vmem %s17_s10, 256  ;;  %p199_p1 = scmp.lt.s32.totalorder %s17_s10, %s17_s10 }
   0x5   :  { %p195_p0 = scmp.ne.s32.totalorder %s17_s10, %s194_s13  ;;  %p200_p2 = scmp.lt.s32.totalorder %s194_s13, %s194_s13 }
   0x7   :  { %p201_p3 = por %p200_p2, %p199_p1 }
   0x9   :  { %p202_p4 = pnand %p201_p3, %p195_p0 }
   0xb   :  { %205 = shalt.err (!%p202_p4)
}
   0xc   :  { %19 = dma.hbm_to_vmem [thread:$0]  %s290_s0, 256, %s17_s10, [#allocation3]  }
   0xd   :  { %s214_s16 = scalar_lea.vmem %s27_s12, 128  ;;  %p219_p6 = scmp.lt.s32.totalorder %s27_s12, %s27_s12 }
   0xe   :  { %p215_p5 = scmp.ne.s32.totalorder %s27_s12, %s214_s16  ;;  %p220_p7 = scmp.lt.s32.totalorder %s214_s16, %s214_s16 }
  0x10   :  { %p221_p8 = por %p220_p7, %p219_p6 }
  0x12   :  { %p222_p9 = pnand %p221_p8, %p215_p5 }
  0x14   :  { %225 = shalt.err (!%p222_p9)
}
  0x15   :  { %29 = dma.hbm_to_vmem [thread:$0]  %s291_s1, 128, %s27_s12, [#allocation6]  }
  0x16   :  { %246 = dma.done.wait [#allocation3], 256  }
  0x17   :  { %247 = vsyncadd [#allocation3], 4294967040 }
  0x18   :  { %248 = dma.done.wait [#allocation6], 128  }
  0x19   :  { %249 = vsyncadd [#allocation6], 4294967168  ;;  %v254_v0 = vmov 0   ;;  %v255_v1 = vmov 8   ;;  %v38_v2 = vld [vmem:[#allocation5] sm:$0xff]  ;;  %v256_v3 = vmov 1  }
  0x1a   :  { %158 = vset.pattern.permute.xlu0 %v254_v0  ;;  %160 = vset.pattern.permute.xlu1 %v255_v1  ;;  %v257_v4 = vmov 2   ;;  %v258_v5 = vmov 3   ;;  %v259_v6 = vmov 9   ;;  %v260_v7 = vmov 4   ;;  %v36_v13 = vld [vmem:[#allocation2] sm:$0xff]  ;;  %v37_v14 = vld [vmem:[#allocation2 + $0x8] sm:$0xff] }
  0x1b   :  { %41 = vperm.xlu0 %158, %v38_v2   ;;  %55 = vperm.xlu1 %160, %v38_v2   ;;  %v261_v8 = vmov 10   ;;  %v262_v9 = vmov 5   ;;  %v263_v10 = vmov 7   ;;  %v264_v11 = vmov 6   ;;  %s265_s0 = smov [#allocation7]  }
  0x1c   :  { %s134_s1 = sshll.u32 %s265_s0, 4  ;;  %s135_s1 = int_to_ptr.vmem [resolvable:$true] %s134_s1 }
  0x1d   :  { %s226_s19 = scalar_lea.vmem %s135_s1, 256  ;;  %p231_p11 = scmp.lt.s32.totalorder %s135_s1, %s135_s1 }
  0x1e   :  { %p227_p10 = scmp.ne.s32.totalorder %s135_s1, %s226_s19  ;;  %p232_p12 = scmp.lt.s32.totalorder %s226_s19, %s226_s19 }
  0x1f   :  { %159 = vset.pattern.permute.xlu0 %v256_v3  ;;  %161 = vset.pattern.permute.xlu1 %v257_v4 }
  0x20   :  { %47 = vperm.xlu0 %159, %v38_v2   ;;  %63 = vperm.xlu1 %161, %v38_v2   ;;  %p233_p13 = por %p232_p12, %p231_p11 }
  0x22   :  { %p234_p0 = pnand %p233_p13, %p227_p10 }
  0x24   :  { %162 = vset.pattern.permute.xlu1 %v258_v5  ;;  %163 = vset.pattern.permute.xlu0 %v259_v6 }
  0x25   :  { %69 = vperm.xlu1 %162, %v38_v2   ;;  %77 = vperm.xlu0 %163, %v38_v2  }
  0x29   :  { %164 = vset.pattern.permute.xlu1 %v260_v7  ;;  %166 = vset.pattern.permute.xlu0 %v261_v8 }
  0x2a   :  { %85 = vperm.xlu1 %164, %v38_v2   ;;  %99 = vperm.xlu0 %166, %v38_v2  }
  0x2e   :  { %165 = vset.pattern.permute.xlu1 %v262_v9  ;;  %169 = vset.pattern.permute.xlu0 %v263_v10 }
  0x2f   :  { %91 = vperm.xlu1 %165, %v38_v2  }
  0x33   :  { %167 = vset.pattern.permute.xlu1 %v264_v11 }
  0x34   :  { %107 = vperm.xlu1 %167, %v38_v2  }
  0x38   :  { %168 = vset.pattern.permute.xlu1 %v263_v10 }
  0x39   :  { %113 = vperm.xlu1 %168, %v38_v2  }
  0x96   :  { %v42_v12 = vpop.permute.xlu0 %41  ;;  %v56_v20 = vpop.permute.xlu1 %55 }
  0x97   :  { %v44_v15 = vmul.f32 %v42_v12, %v36_v13  ;;  %v45_v16 = vmul.f32 %v42_v12, %v37_v14 }
  0x9b   :  { %v48_v17 = vpop.permute.xlu0 %47  ;;  %v64_v21 = vpop.permute.xlu1 %63 }
  0x9c   :  { %v50_v18 = vadd.f32 %v48_v17, %v44_v15  ;;  %v51_v19 = vadd.f32 %v48_v17, %v45_v16 }
  0x9e   :  { %170 = vtanh.f32 %v50_v18 }
  0x9f   :  { %172 = vtanh.f32 %v51_v19 }
  0xa0   :  { %v70_v28 = vpop.permute.xlu1 %69  ;;  %v78_v33 = vpop.permute.xlu0 %77 }
  0xa5   :  { %v86_v34 = vpop.permute.xlu1 %85  ;;  %v100_v46 = vpop.permute.xlu0 %99 }
  0xaa   :  { %v92_v41 = vpop.permute.xlu1 %91 }
  0xab   :  { %v171_v22 = vpop.eup %170 }
  0xac   :  { %v173_v23 = vpop.eup %172  ;;  %v58_v24 = vmul.f32 %v171_v22, %v56_v20 }
  0xad   :  { %v59_v25 = vmul.f32 %v173_v23, %v56_v20 }
  0xae   :  { %v60_v26 = vadd.f32 %v58_v24, %v50_v18 }
  0xaf   :  { %v61_v27 = vadd.f32 %v59_v25, %v51_v19  ;;  %v108_v47 = vpop.permute.xlu1 %107 }
  0xb0   :  { %v66_v29 = vmul.f32 %v64_v21, %v60_v26 }
  0xb1   :  { %v67_v30 = vmul.f32 %v64_v21, %v61_v27 }
  0xb2   :  { %v72_v31 = vadd.f32 %v70_v28, %v66_v29 }
  0xb3   :  { %v73_v32 = vadd.f32 %v70_v28, %v67_v30 }
  0xb4   :  { %174 = vtanh.f32 %v72_v31  ;;  %v114_v54 = vpop.permute.xlu1 %113 }
  0xb5   :  { %176 = vtanh.f32 %v73_v32 }
  0xc1   :  { %v175_v35 = vpop.eup %174 }
  0xc2   :  { %v177_v36 = vpop.eup %176  ;;  %v80_v37 = vmul.f32 %v175_v35, %v78_v33 }
  0xc3   :  { %v81_v38 = vmul.f32 %v177_v36, %v78_v33 }
  0xc4   :  { %v82_v39 = vadd.f32 %v80_v37, %v72_v31 }
  0xc5   :  { %v83_v40 = vadd.f32 %v81_v38, %v73_v32 }
  0xc6   :  { %v88_v42 = vmul.f32 %v86_v34, %v82_v39 }
  0xc7   :  { %v89_v43 = vmul.f32 %v86_v34, %v83_v40 }
  0xc8   :  { %v94_v44 = vadd.f32 %v92_v41, %v88_v42 }
  0xc9   :  { %v95_v45 = vadd.f32 %v92_v41, %v89_v43 }
  0xca   :  { %178 = vtanh.f32 %v94_v44 }
  0xcb   :  { %180 = vtanh.f32 %v95_v45 }
  0xd7   :  { %v179_v48 = vpop.eup %178 }
  0xd8   :  { %v181_v49 = vpop.eup %180  ;;  %v102_v50 = vmul.f32 %v179_v48, %v100_v46 }
  0xd9   :  { %v103_v51 = vmul.f32 %v181_v49, %v100_v46 }
  0xda   :  { %v104_v52 = vadd.f32 %v102_v50, %v94_v44 }
  0xdb   :  { %v105_v53 = vadd.f32 %v103_v51, %v95_v45 }
  0xdc   :  { %v110_v55 = vmul.f32 %v108_v47, %v104_v52 }
  0xdd   :  { %v111_v56 = vmul.f32 %v108_v47, %v105_v53 }
  0xde   :  { %v116_v57 = vadd.f32 %v114_v54, %v110_v55 }
  0xdf   :  { %v117_v58 = vadd.f32 %v114_v54, %v111_v56 }
  0xe0   :  { %v118_v59 = vmul.f32 0.5, %v116_v57 }
  0xe1   :  { %v119_v60 = vmul.f32 0.5, %v117_v58 }
  0xe2   :  { %182 = vtanh.f32 %v118_v59 }
  0xe3   :  { %184 = vtanh.f32 %v119_v60 }
  0xef   :  { %v183_v61 = vpop.eup %182 }
  0xf0   :  { %v185_v62 = vpop.eup %184  ;;  %v122_v63 = vmul.f32 0.5, %v183_v61 }
  0xf1   :  { %v123_v0 = vmul.f32 0.5, %v185_v62 }
  0xf2   :  { %v124_v1 = vadd.f32 0.5, %v122_v63 }
  0xf3   :  { %v125_v2 = vadd.f32 0.5, %v123_v0 }
  0xf4   :  { %126 = vst [vmem:[#allocation7] sm:$0xff] %v124_v1 }
  0xf5   :  { %127 = vst [vmem:[#allocation7 + $0x8] sm:$0xff] %v125_v2 }
  0xf6   :  { %237 = shalt.err (!%p234_p0)
}
  0xf7   :  { %137 = dma.vmem_to_hbm [thread:$0]  %s135_s1, 256, %s292_s2, [#allocation4]  }
  0xf8   :  { %250 = dma.done.wait [#allocation4], 256  }
  0xf9   :  { %251 = vsyncadd [#allocation4], 4294967040 }
  0xfa   :  { %141 = vsyncpa [#allocation3], 1 }
  0xfb   :  { %142 = vsyncpa [#allocation6], 1 }
  0xfc   :  { %143 = vsyncpa [#allocation4], 1 }

</bundles_post_ra>
